<compile_context>
chip_gen: v6e
topology: v6e:2x2x1
jax: 0.10.0
libtpu: 0.0.40
codegen_flags: <defaults>
</compile_context>

<pallas_src>
import math

import jax
import jax.numpy as jnp
from jax.experimental import pallas as pl
from jax.experimental.pallas import tpu as pltpu


def fnn_kernel(x_ref, w1_ref, b1_ref, w2_ref, b2_ref, o_ref):
    # fc1: (TILE_B, in) bf16 @ (in, hid) bf16 on the MXU, f32 accumulation.
    h = jnp.dot(x_ref[...], w1_ref[...], preferred_element_type=jnp.float32)
    h = jnp.maximum(h + b1_ref[...], 0.0)          # bias + ReLU in f32 (VPU)
    # fc2: cast activations to bf16 only at the MXU boundary; accumulate f32.
    y = jnp.dot(h.astype(jnp.bfloat16), w2_ref[...],
                preferred_element_type=jnp.float32)
    o_ref[...] = (y + b2_ref[...]).astype(o_ref.dtype)


def _vmem_bytes(tile_b, in_size, hid, out_size):
    """VMEM footprint for one configuration (weights single-buffered)."""
    weights = in_size * hid * 2 + hid * out_size * 2 + hid * 4 + out_size * 4
    x_tiles = 2 * tile_b * in_size * 2          # bf16 input, double-buffered
    o_tiles = 2 * tile_b * out_size * 4         # f32 output, double-buffered
    live = tile_b * hid * 4 + tile_b * out_size * 4   # in-kernel f32 h / y
    return weights + x_tiles + o_tiles + live


def _physical_vmem_bytes():
    try:
        info = pltpu.get_tpu_info()
        return int(getattr(info, "vmem_capacity_bytes", 64 * 1024 * 1024))
    except Exception:
        # Conservative fallback = v7x physical VMEM (smallest across gens).
        return 64 * 1024 * 1024


def _pick_tile_b(B, in_size, hid, out_size, vmem_cap):
    candidates = (1024, 512, 256, 128, 64, 32, 16, 8)
    feasible = [t for t in candidates
                if _vmem_bytes(t, in_size, hid, out_size) <= vmem_cap]
    if not feasible:
        feasible = [8]
    divisible = [t for t in feasible if B % t == 0]
    # >= 4 grid steps -> >= 2 steps per TensorCore, hides pipeline prologue.
    multi_step = [t for t in divisible if B // t >= 4]
    if multi_step:
        return multi_step[0]
    if divisible:
        return divisible[0]
    return feasible[0]


def fnn_forward(x, w1, b1, w2, b2, *, tile_b=None):
    """x: (B, input_size); w1/w2 bf16 in (in, out) layout; b1/b2 f32 (1, N)."""
    B, in_size = x.shape
    hid = w1.shape[1]
    out_size = w2.shape[1]

    # Cast the input to bf16 in the wrapper: halves x HBM traffic (mem-bound)
    # and removes the per-tile cast inside the kernel.
    x = x.astype(jnp.bfloat16)

    vmem_cap = int(_physical_vmem_bytes() * 0.75)
    if tile_b is None:
        tile_b = _pick_tile_b(B, in_size, hid, out_size, vmem_cap)

    n_tiles = pl.cdiv(B, tile_b)
    B_pad = n_tiles * tile_b
    if B_pad != B:
        # Ragged tail only; tile_b selection avoids this when B % tile_b == 0.
        x = jnp.pad(x, ((0, B_pad - B), (0, 0)))

    needed = _vmem_bytes(tile_b, in_size, hid, out_size)
    vmem_limit = int(min(vmem_cap, max(needed + (4 << 20), 16 << 20)))

    flops = 2 * B_pad * (in_size * hid + hid * out_size)
    bytes_accessed = (B_pad * in_size * 2            # bf16 x
                      + in_size * hid * 2 + hid * 4  # w1, b1
                      + hid * out_size * 2 + out_size * 4  # w2, b2
                      + B_pad * out_size * 4)        # f32 out
    cost = pl.CostEstimate(flops=flops, transcendentals=0,
                           bytes_accessed=bytes_accessed)

    resident = pl.Buffered(1)   # constant-index operands: single buffer

    out = pl.pallas_call(
        fnn_kernel,
        out_shape=jax.ShapeDtypeStruct((B_pad, out_size), jnp.float32),
        grid=(n_tiles,),
        in_specs=[
            pl.BlockSpec((tile_b, in_size), lambda i: (i, 0)),   # x tile
            pl.BlockSpec((in_size, hid), lambda i: (0, 0),
                         pipeline_mode=resident),                # w1 resident
            pl.BlockSpec((1, hid), lambda i: (0, 0),
                         pipeline_mode=resident),                # b1 resident
            pl.BlockSpec((hid, out_size), lambda i: (0, 0),
                         pipeline_mode=resident),                # w2 resident
            pl.BlockSpec((1, out_size), lambda i: (0, 0),
                         pipeline_mode=resident),                # b2 resident
        ],
        out_specs=pl.BlockSpec((tile_b, out_size), lambda i: (i, 0)),
        compiler_params=pltpu.CompilerParams(
            dimension_semantics=("parallel",),       # megacore / v7x 2-TC
            vmem_limit_bytes=vmem_limit,
        ),
        cost_estimate=cost,
    )(x, w1, b1, w2, b2)

    if B_pad != B:
        out = out[:B]
    return out


def init_params(key, input_size, hidden_size, output_size):
    """Mimics nn.Linear's U(-1/sqrt(fan_in), 1/sqrt(fan_in)) init.

    Weights are returned already transposed to (in, out) layout and cast to
    bf16 (MXU-native); biases stay f32 as (1, N) rows.
    """
    k1, k2, k3, k4 = jax.random.split(key, 4)
    lim1 = 1.0 / math.sqrt(input_size)
    lim2 = 1.0 / math.sqrt(hidden_size)
    w1 = jax.random.uniform(k1, (input_size, hidden_size), jnp.float32,
                            -lim1, lim1).astype(jnp.bfloat16)
    b1 = jax.random.uniform(k2, (1, hidden_size), jnp.float32, -lim1, lim1)
    w2 = jax.random.uniform(k3, (hidden_size, output_size), jnp.float32,
                            -lim2, lim2).astype(jnp.bfloat16)
    b2 = jax.random.uniform(k4, (1, output_size), jnp.float32, -lim2, lim2)
    return w1, b1, w2, b2


if __name__ == "__main__":
    # Lane-dense demo shapes: feature dims are multiples of 256 (fill the
    # v6e/v7x 256x256 MXU K dim); batch=512 -> tile_b=128, 4 grid steps
    # (>= 2 pipelined steps per TensorCore), no padding copy.
    batch = 512
    input_size = 256
    hidden_size = 256
    output_size = 256

    key = jax.random.PRNGKey(0)
    kx, kp = jax.random.split(key)
    x = jax.random.normal(kx, (batch, input_size), jnp.float32)
    w1, b1, w2, b2 = init_params(kp, input_size, hidden_size, output_size)

    out = fnn_forward(x, w1, b1, w2, b2)
    jax.block_until_ready(out)

    # Reference with identical numerics (bf16 MXU inputs, f32 accumulation).
    xb = x.astype(jnp.bfloat16)
    h_ref = jnp.maximum(
        jnp.dot(xb, w1, preferred_element_type=jnp.float32) + b1, 0.0)
    ref = jnp.dot(h_ref.astype(jnp.bfloat16), w2,
                  preferred_element_type=jnp.float32) + b2

    assert out.shape == (batch, output_size)
    assert jnp.allclose(out, ref, atol=2e-2, rtol=2e-2), (
        float(jnp.max(jnp.abs(out - ref))))

    print("KERNEL_OK")
</pallas_src>

<mosaic_0001>
module attributes {stable_mosaic.version = 11 : i64} {
  func.func @fnn_kernel(%arg0: i32, %arg1: memref<128x256xbf16, #tpu.memory_space<vmem>>, %arg2: memref<256x256xbf16, #tpu.memory_space<vmem>>, %arg3: memref<1x256xf32, #tpu.memory_space<vmem>>, %arg4: memref<256x256xbf16, #tpu.memory_space<vmem>>, %arg5: memref<1x256xf32, #tpu.memory_space<vmem>>, %arg6: memref<128x256xf32, #tpu.memory_space<vmem>>) attributes {dimension_semantics = [#tpu.dimension_semantics<parallel>], iteration_bounds = array<i64: 4>, scalar_prefetch = 0 : i64, scratch_operands = 0 : i64, tpu.core_type = #tpu.core_type<tc>, window_params = [{transform_indices = @transform_0, window_bounds = array<i64: 128, 256>}, {pipeline_mode = #tpu.pipeline_mode<synchronous>, transform_indices = @transform_1, window_bounds = array<i64: 256, 256>}, {pipeline_mode = #tpu.pipeline_mode<synchronous>, transform_indices = @transform_2, window_bounds = array<i64: 1, 256>}, {pipeline_mode = #tpu.pipeline_mode<synchronous>, transform_indices = @transform_3, window_bounds = array<i64: 256, 256>}, {pipeline_mode = #tpu.pipeline_mode<synchronous>, transform_indices = @transform_4, window_bounds = array<i64: 1, 256>}, {transform_indices = @transform_5, window_bounds = array<i64: 128, 256>}]} {
    %c0 = arith.constant 0 : index
    %c0_0 = arith.constant 0 : index
    %0 = vector.load %arg1[%c0, %c0_0] : memref<128x256xbf16, #tpu.memory_space<vmem>>, vector<128x256xbf16>
    %c0_1 = arith.constant 0 : index
    %c0_2 = arith.constant 0 : index
    %1 = vector.load %arg2[%c0_1, %c0_2] : memref<256x256xbf16, #tpu.memory_space<vmem>>, vector<256x256xbf16>
    %cst = arith.constant dense<0.000000e+00> : vector<128x256xf32>
    %2 = tpu.matmul %0, %1, %cst {dimension_numbers = #tpu.dot_dimension_numbers<[1], [0], [0], [1], [0, 0, 1, 1], [], []>} : vector<128x256xbf16>, vector<256x256xbf16>, vector<128x256xf32> -> vector<128x256xf32>
    %c0_3 = arith.constant 0 : index
    %c0_4 = arith.constant 0 : index
    %3 = vector.load %arg3[%c0_3, %c0_4] : memref<1x256xf32, #tpu.memory_space<vmem>>, vector<1x256xf32>
    %4 = vector.broadcast %3 : vector<1x256xf32> to vector<128x256xf32>
    %5 = arith.addf %2, %4 : vector<128x256xf32>
    %cst_5 = arith.constant 0.000000e+00 : f32
    %6 = vector.broadcast %cst_5 : f32 to vector<128x256xf32>
    %7 = arith.maximumf %5, %6 : vector<128x256xf32>
    %8 = arith.truncf %7 : vector<128x256xf32> to vector<128x256xbf16>
    %c0_6 = arith.constant 0 : index
    %c0_7 = arith.constant 0 : index
    %9 = vector.load %arg4[%c0_6, %c0_7] : memref<256x256xbf16, #tpu.memory_space<vmem>>, vector<256x256xbf16>
    %cst_8 = arith.constant dense<0.000000e+00> : vector<128x256xf32>
    %10 = tpu.matmul %8, %9, %cst_8 {dimension_numbers = #tpu.dot_dimension_numbers<[1], [0], [0], [1], [0, 0, 1, 1], [], []>} : vector<128x256xbf16>, vector<256x256xbf16>, vector<128x256xf32> -> vector<128x256xf32>
    %c0_9 = arith.constant 0 : index
    %c0_10 = arith.constant 0 : index
    %11 = vector.load %arg5[%c0_9, %c0_10] : memref<1x256xf32, #tpu.memory_space<vmem>>, vector<1x256xf32>
    %12 = vector.broadcast %11 : vector<1x256xf32> to vector<128x256xf32>
    %13 = arith.addf %10, %12 : vector<128x256xf32>
    %c0_11 = arith.constant 0 : index
    %c0_12 = arith.constant 0 : index
    %14 = vector.load %arg6[%c0_11, %c0_12] : memref<128x256xf32, #tpu.memory_space<vmem>>, vector<128x256xf32>
    tpu.vector_store %arg6[%c0_11, %c0_12], %13 {strides = array<i32>} : memref<128x256xf32, #tpu.memory_space<vmem>>, vector<128x256xf32>,
    return
  }
  func.func @transform_0(%arg0: i32) -> (i32, i32) {
    %c0_i32 = arith.constant 0 : i32
    %c0_i32_0 = arith.constant 0 : i32
    return %arg0, %c0_i32 : i32, i32
  }
  func.func @transform_1(%arg0: i32) -> (i32, i32) {
    %c0_i32 = arith.constant 0 : i32
    %c0_i32_0 = arith.constant 0 : i32
    %c0_i32_1 = arith.constant 0 : i32
    return %c0_i32, %c0_i32_0 : i32, i32
  }
  func.func @transform_2(%arg0: i32) -> (i32, i32) {
    %c0_i32 = arith.constant 0 : i32
    %c0_i32_0 = arith.constant 0 : i32
    %c0_i32_1 = arith.constant 0 : i32
    return %c0_i32, %c0_i32_0 : i32, i32
  }
  func.func @transform_3(%arg0: i32) -> (i32, i32) {
    %c0_i32 = arith.constant 0 : i32
    %c0_i32_0 = arith.constant 0 : i32
    %c0_i32_1 = arith.constant 0 : i32
    return %c0_i32, %c0_i32_0 : i32, i32
  }
  func.func @transform_4(%arg0: i32) -> (i32, i32) {
    %c0_i32 = arith.constant 0 : i32
    %c0_i32_0 = arith.constant 0 : i32
    %c0_i32_1 = arith.constant 0 : i32
    return %c0_i32, %c0_i32_0 : i32, i32
  }
  func.func @transform_5(%arg0: i32) -> (i32, i32) {
    %c0_i32 = arith.constant 0 : i32
    %c0_i32_0 = arith.constant 0 : i32
    return %arg0, %c0_i32 : i32, i32
  }
}

</mosaic_0001>

<bundles_post_ra>
// kernel: tpu_custom_call.1
= control target key start
LH: loop header
LB: loop body
LE: loop exit
PB: predicated region body
PF: predicated region fallthrough
CT: control target
= control target key end

     0   :  { %10 = vsyncpa [#allocation3], 0  ;;  %s2014_s0 = inlined_call_operand.hbm [shape: bf16[512,256], index: 0, kind: input, shape index: {}]   ;;  %s2015_s1 = inlined_call_operand.hbm [shape: bf16[256,256], index: 1, kind: input, shape index: {}]   ;;  %s2016_s2 = inlined_call_operand.vmem [shape: f32[1,256], index: 2, kind: input, shape index: {}]   ;;  %s2017_s3 = inlined_call_operand.hbm [shape: bf16[256,256], index: 3, kind: input, shape index: {}]   ;;  %s2018_s4 = inlined_call_operand.vmem [shape: f32[1,256], index: 4, kind: input, shape index: {}]   ;;  %s2019_s5 = inlined_call_operand.hbm [shape: f32[512,256], index: 5, kind: output, shape index: {}]  }
   0x1   :  { %12 = vsyncpa [#allocation3 + $0x1], 0 }
   0x2   :  { %13 = vsyncpa [#allocation6], 0 }
   0x3   :  { %14 = vsyncpa [#allocation4], 0 }
   0x4   :  { %16 = vsyncpa [#allocation4 + $0x1], 0  ;;  %s1675_s18 = smov 0   ;;  %s1677_s19 = smov 0  }
   0x5   :  { %s1679_s20 = smov 0   ;;  %s1681_s21 = smov 0  }
   0x6 LB: > { %s1696_s22 = sadd.s32 4294967295, %s1635_s21   ;;  %s1192_s23 = sadd.s32 4294967294, %s1635_s21   ;;  %s1635_s21 = sphi %s1681_s21, %s2041_s21   ;;  %s1631_s20 = sphi %s1679_s20, %s2040_s20   ;;  %s1627_s19 = sphi %s1677_s19, %s2039_s19   ;;  %s1623_s18 = sphi %s1675_s18, %s2038_s18  }
   0x7   : > { %p42_p0 = scmp.ne.s32.totalorder %s1627_s19, %s1623_s18  ;;  %p2020_p1 = scmp.eq.s32.totalorder %s1696_s22, 0 }
   0x8   : > { %p150_p2 = scmp.eq.s32.totalorder %s1696_s22, 3  ;;  %p156_p3 = scmp.eq.s32.totalorder %s1192_s23, 3 }
   0x9   : > { %p1705_p4 = por %p2020_p1, %p42_p0  ;;  %p1193_p5 = scmp.ge.s32.totalorder %s1635_s21, 1 }
   0xa   : > { %p1710_p6 = por %p156_p3, %p42_p0  ;;  %p163_p7 = scmp.lt.s32.totalorder %s1635_s21, 5 }
   0xb   : > { %s2025_s24 = scalar_select %p1705_p4, 1, 0 }
   0xc   : > { %s2026_s25 = scalar_select %p1710_p6, 1, 0 }
   0xd   : > { %p1715_p8 = pnand %p1193_p5, %p163_p7  ;;  %s1637_s27 = smov [#allocation5]  }
   0xe   : > { %s175_s28 = sshll.u32 %s1637_s27, 4  ;;  %s1638_s30 = smov [#allocation7]   ;;  %s176_s28 = int_to_ptr.vmem [resolvable:$true] %s175_s28 }
   0xf   : > { %s2027_s26 = scalar_select %p1715_p8, 1, 0 }
  0x10   : > { %p1308_p9 = pneg %p1715_p8  ;;  %s191_s6 = sshll.u32 %s1638_s30, 4  ;;  %s192_s6 = int_to_ptr.vmem [resolvable:$true] %s191_s6 }
  0x11   : > { %s1498_s7 = scalar_lea.vmem %s176_s28, 4096  ;;  %p1506_p3 = scmp.lt.s32.totalorder %s176_s28, %s176_s28 }
  0x12   : > { %p1723_p10 = pnand %p1308_p9, %p2020_p1  ;;  %p1499_p12 = scmp.ne.s32.totalorder %s176_s28, %s1498_s7 }
  0x13   : > { %p1507_p5 = scmp.lt.s32.totalorder %s1498_s7, %s1498_s7 }
  0x14   : > { %p1489_p11 = pneg %p1723_p10 }
  0x15   : > { %p1508_p7 = por %p1507_p5, %p1506_p3 }
  0x16   : > { %p1501_p13 = pnand %p1499_p12, %p1489_p11 }
  0x18   : > { %p1502_p0 = pneg %p1501_p13 }
  0x1a   : > { %p1509_p9 = pnand %p1508_p7, %p1502_p0 }
  0x1c   : > { %1512 = shalt.err (!%p1509_p9)
}
  0x1d   : > { %s2021_s8 = smov 128   ;;  %s1640_s9 = smov 8  }
  0x1e   : > { %1311 = dma.hbm_to_vmem [thread:$0]  (!%p1723_p10), %s2015_s1, 4096, %s176_s28, [#allocation6], %s2021_s8, %s2021_s8, %s1640_s9  }
  0x1f   : > { %s1524_s12 = scalar_lea.vmem %s192_s6, 4096  ;;  %p1532_p0 = scmp.lt.s32.totalorder %s192_s6, %s192_s6 }
  0x20   : > { %p1525_p12 = scmp.ne.s32.totalorder %s192_s6, %s1524_s12  ;;  %p1533_p5 = scmp.lt.s32.totalorder %s1524_s12, %s1524_s12 }
  0x22   : > { %p1527_p13 = pnand %p1525_p12, %p1489_p11  ;;  %p1534_p7 = por %p1533_p5, %p1532_p0 }
  0x24   : > { %p1528_p3 = pneg %p1527_p13 }
  0x26   : > { %p1535_p9 = pnand %p1534_p7, %p1528_p3 }
  0x28   : > { %1538 = shalt.err (!%p1535_p9)
}
  0x29   : > { %1314 = dma.hbm_to_vmem [thread:$0]  (!%p1723_p10), %s2017_s3, 4096, %s192_s6, [#allocation6], %s2021_s8, %s2021_s8, %s1640_s9  }
  0x2a   : > { %s1752_s15 = sadd.s32 1, %s1635_s21   ;;  %s29_s16 = sadd.s32 1, %s1631_s20 }
  0x2b   : > { %s26_s17 = ssub.s32 %s1635_s21, %s1752_s15  ;;  %p36_p11 = scmp.ne.s32.totalorder %s1631_s20, %s1627_s19 }
  0x2c   : > { %p27_p12 = scmp.eq.s32.totalorder %s26_s17, 0  ;;  %p37_p13 = scmp.eq.s32.totalorder %s1635_s21, 0 }
  0x2d   : > { %p1762_p3 = por %p150_p2, %p36_p11  ;;  %p1325_p0 = scmp.lt.s32.totalorder %s1635_s21, 4 }
  0x2e   : > { %s1768_s27 = scalar_select %p27_p12, %s1631_s20, %s29_s16  }
  0x2f   : > { %s2029_s23 = scalar_select %p1762_p3, 1, 0 }
  0x30   : > { %p38_p5 = por %p37_p13, %p36_p11  ;;  %s208_s28 = sand.u32 1, %s1631_s20  }
  0x31   : > { %s1197_s29 = sshll.u32 %s208_s28, 7  ;;  %s1293_s30 = sshll.u32 %s1635_s21, 11 }
  0x32   : > { %s1775_s10 = scalar_lea.hbm %s2014_s0, %s1293_s30  ;;  %s212_s11 = scalar_lea.vmem [#allocation2], %s1197_s29 }
  0x33   : > { %s220_s12 = sshll.u32 %s212_s11, 4  ;;  %p1779_p2 = pnand %p1325_p0, %p38_p5  ;;  %s1777_s12 = int_to_ptr.vmem [resolvable:$true] %s220_s12 }
  0x34   : > { %s1783_s14 = scalar_lea.sflag [#allocation3], %s208_s28  ;;  %s1539_s16 = scalar_lea.hbm %s1775_s10, 2048 }
  0x35   : > { %p1540_p10 = scmp.ne.s32.totalorder %s1775_s10, %s1539_s16  ;;  %p1541_p7 = pneg %p1779_p2 }
  0x36   : > { %s1544_s29 = scalar_lea.hbm %s2014_s0, 8192  ;;  %p1545_p12 = scmp.lt.s32.totalorder %s1775_s10, %s2014_s0 }
  0x37   : > { %p1542_p9 = pnand %p1541_p7, %p1540_p10  ;;  %p1546_p13 = scmp.lt.s32.totalorder %s1544_s29, %s1539_s16 }
  0x39   : > { %p1543_p11 = pneg %p1542_p9  ;;  %p1547_p0 = por %p1546_p13, %p1545_p12 }
  0x3b   : > { %p1548_p5 = pnand %p1547_p0, %p1543_p11 }
  0x3d   : > { %1551 = shalt.err (!%p1548_p5)
}
  0x3e   : > { %s1552_s28 = scalar_lea.vmem %s1777_s12, 2048  ;;  %s1641_s11 = smov [#allocation2]  }
  0x3f   : > { %p1553_p1 = scmp.ne.s32.totalorder %s1777_s12, %s1552_s28  ;;  %s1557_s8 = sshll.u32 %s1641_s11, 4  ;;  %s1558_s8 = int_to_ptr.vmem [resolvable:$false] %s1557_s8 }
  0x40   : > { %s1559_s17 = scalar_lea.vmem %s1558_s8, 4096  ;;  %p1560_p9 = scmp.lt.s32.totalorder %s1777_s12, %s1558_s8 }
  0x41   : > { %p1555_p6 = pnand %p1553_p1, %p1541_p7  ;;  %p1561_p3 = scmp.lt.s32.totalorder %s1559_s17, %s1552_s28 }
  0x43   : > { %p1556_p10 = pneg %p1555_p6  ;;  %p1562_p4 = por %p1561_p3, %p1560_p9 }
  0x45   : > { %p1563_p8 = pnand %p1562_p4, %p1556_p10 }
  0x47   : > { %1566 = shalt.err (!%p1563_p8)
}
  0x48   : > { %s2031_s16 = smov 128   ;;  %p2032_p1 = scmp.ne.s32.totalorder %s2027_s26, 0 }
  0x49   : > { %1318 = dma.hbm_to_vmem [thread:$0]  (!%p1779_p2), %s1775_s10, 2048, %s1777_s12, %s1783_s14, %s2031_s16, %s2031_s16, %s1640_s9  }
  0x4a   : > { %232 = sbr.rel (%p2032_p1) target bundleno = 625 (0x271), region = 40  ;;  %s1810_s30 = sand.u32 (!%p2032_p1), 1, %s1627_s19  }
  0x4b   : > { %s1202_s8 = sshll.u32 (!%p2032_p1), %s1810_s30, 7  ;;  %s235_s29 = scalar_lea.sflag (!%p2032_p1), [#allocation3], %s1810_s30 }
  0x4c   : > { %s1814_s6 = scalar_lea.vmem (!%p2032_p1), [#allocation2], %s1202_s8  ;;  %p2033_p4 = scmp.ne.s32.totalorder (!%p2032_p1), %s2025_s24, 0 }
  0x4f   : > { %1610 = dma.done.wait (%p2033_p4), %s235_s29, 2048  }
  0x50   : > { %1612 = vsyncadd (%p2033_p4), %s235_s29, 4294965248  ;;  %p2034_p6 = scmp.eq.s32.totalorder %s1696_s22, 0 }
  0x52   : > { %1614 = dma.done.wait (%p2034_p6), [#allocation6], 8192   ;;  %p2035_p8 = pmov %p2034_p6 }
  0x53   : > { %v1367_v0 = vld [vmem:[#allocation5 + $0x74] ss:$8 sps:$4 sm:$0xff]   ;;  %v1369_v1 = vld [vmem:[#allocation5 + $0x70] ss:$8 sps:$4 sm:$0xff]   ;;  %v1370_v2 = vld [vmem:[#allocation5 + $0x64] ss:$8 sps:$4 sm:$0xff]  }
  0x54   : > { %1616 = vsyncadd (%p2035_p8), [#allocation6], 4294959104  ;;  %575 = vmatprep.subr.bf16.mxu0 %v1367_v0  ;;  %v1372_v3 = vld [vmem:[#allocation5 + $0x60] ss:$8 sps:$4 sm:$0xff]   ;;  %v1373_v4 = vld [vmem:[#allocation5 + $0x54] ss:$8 sps:$4 sm:$0xff]  }
  0x55   : > { %576 = vmatpush1.bf16.msra.mxu0 %v1369_v1  ;;  %v1375_v5 = vld [vmem:[#allocation5 + $0x50] ss:$8 sps:$4 sm:$0xff]   ;;  %v1376_v6 = vld [vmem:[#allocation5 + $0x44] ss:$8 sps:$4 sm:$0xff]   ;;  %v1378_v7 = vld [vmem:[#allocation5 + $0x40] ss:$8 sps:$4 sm:$0xff]  }
  0x56   : > { %577 = vmatprep.subr.bf16.mxu0 %v1370_v2  ;;  %v1379_v8 = vld [vmem:[#allocation5 + $0x34] ss:$8 sps:$4 sm:$0xff]   ;;  %v1381_v9 = vld [vmem:[#allocation5 + $0x30] ss:$8 sps:$4 sm:$0xff]   ;;  %v1382_v10 = vld [vmem:[#allocation5 + $0x24] ss:$8 sps:$4 sm:$0xff]  }
  0x57   : > { %v1384_v11 = vld [vmem:[#allocation5 + $0x20] ss:$8 sps:$4 sm:$0xff]   ;;  %v1385_v12 = vld [vmem:[#allocation5 + $0x14] ss:$8 sps:$4 sm:$0xff]   ;;  %v1417_v13 = vld [vmem:[%s1814_s6 + $0x4] ss:$8 sps:$4 sm:$0xff]  }
  0x58   : > { %v1387_v14 = vld [vmem:[#allocation5 + $0x10] ss:$8 sps:$4 sm:$0xff]   ;;  %v1388_v15 = vld [vmem:[#allocation5 + $0x4] ss:$8 sps:$4 sm:$0xff]   ;;  %607 = vmatprep.mubr.bf16.mxu0 %v1417_v13  ;;  %v1390_v16 = vld [vmem:[#allocation5] ss:$8 sps:$4 sm:$0xff]  }
  0x59   : > { %578 = vmatpush1.bf16.msra.mxu0 %v1372_v3  ;;  %v1391_v17 = vld [vmem:[#allocation5 + $0xf4] ss:$8 sps:$4 sm:$0xff]   ;;  %v1393_v18 = vld [vmem:[#allocation5 + $0xf0] ss:$8 sps:$4 sm:$0xff]   ;;  %v1394_v19 = vld [vmem:[#allocation5 + $0xe4] ss:$8 sps:$4 sm:$0xff]  }
  0x5a   : > { %579 = vmatprep.subr.bf16.mxu0 %v1373_v4  ;;  %v1439_v20 = vld [vmem:[#allocation7 + $0x74] ss:$8 sps:$4 sm:$0xff]   ;;  %v1441_v21 = vld [vmem:[#allocation7 + $0x70] ss:$8 sps:$4 sm:$0xff]   ;;  %v1396_v22 = vld [vmem:[#allocation5 + $0xe0] ss:$8 sps:$4 sm:$0xff]  }
  0x5b   : > { %940 = vmatprep.subr.bf16.mxu1 %v1439_v20  ;;  %v1442_v23 = vld [vmem:[#allocation7 + $0x64] ss:$8 sps:$4 sm:$0xff]   ;;  %v1397_v24 = vld [vmem:[#allocation5 + $0xd4] ss:$8 sps:$4 sm:$0xff]   ;;  %v1444_v25 = vld [vmem:[#allocation7 + $0x60] ss:$8 sps:$4 sm:$0xff]  }
  0x5c   : > { %941 = vmatpush1.bf16.msra.mxu1 %v1441_v21  ;;  %v1445_v26 = vld [vmem:[#allocation7 + $0x54] ss:$8 sps:$4 sm:$0xff]   ;;  %v1399_v27 = vld [vmem:[#allocation5 + $0xd0] ss:$8 sps:$4 sm:$0xff]   ;;  %v1400_v28 = vld [vmem:[#allocation5 + $0xc4] ss:$8 sps:$4 sm:$0xff]  }
  0x5d   : > { %580 = vmatpush1.bf16.msra.mxu0 %v1375_v5  ;;  %942 = vmatprep.subr.bf16.mxu1 %v1442_v23  ;;  %v1447_v29 = vld [vmem:[#allocation7 + $0x50] ss:$8 sps:$4 sm:$0xff]   ;;  %v1448_v30 = vld [vmem:[#allocation7 + $0x44] ss:$8 sps:$4 sm:$0xff]   ;;  %v1402_v31 = vld [vmem:[#allocation5 + $0xc0] ss:$8 sps:$4 sm:$0xff]  }
  0x5e   : > { %581 = vmatprep.subr.bf16.mxu0 %v1376_v6  ;;  %v1403_v32 = vld [vmem:[#allocation5 + $0xb4] ss:$8 sps:$4 sm:$0xff]   ;;  %v1450_v33 = vld [vmem:[#allocation7 + $0x40] ss:$8 sps:$4 sm:$0xff]   ;;  %v1405_v35 = vld [vmem:[#allocation5 + $0xb0] ss:$8 sps:$4 sm:$0xff]  }
  0x5f   : > { %v1451_v34 = vld [vmem:[#allocation7 + $0x34] ss:$8 sps:$4 sm:$0xff]   ;;  %v1406_v36 = vld [vmem:[#allocation5 + $0xa4] ss:$8 sps:$4 sm:$0xff]   ;;  %v1453_v37 = vld [vmem:[#allocation7 + $0x30] ss:$8 sps:$4 sm:$0xff]  }
  0x60   : > { %943 = vmatpush1.bf16.msra.mxu1 %v1444_v25  ;;  %v1454_v38 = vld [vmem:[#allocation7 + $0x24] ss:$8 sps:$4 sm:$0xff]   ;;  %v1408_v39 = vld [vmem:[#allocation5 + $0xa0] ss:$8 sps:$4 sm:$0xff]   ;;  %v1409_v41 = vld [vmem:[#allocation5 + $0x94] ss:$8 sps:$4 sm:$0xff]  }
  0x61   : > { %582 = vmatpush1.bf16.msra.mxu0 %v1378_v7  ;;  %944 = vmatprep.subr.bf16.mxu1 %v1445_v26  ;;  %v1456_v40 = vld [vmem:[#allocation7 + $0x20] ss:$8 sps:$4 sm:$0xff]   ;;  %v1457_v42 = vld [vmem:[#allocation7 + $0x14] ss:$8 sps:$4 sm:$0xff]   ;;  %v1411_v43 = vld [vmem:[#allocation5 + $0x90] ss:$8 sps:$4 sm:$0xff]  }
  0x62   : > { %583 = vmatprep.subr.bf16.mxu0 %v1379_v8  ;;  %v1459_v44 = vld [vmem:[#allocation7 + $0x10] ss:$8 sps:$4 sm:$0xff]   ;;  %v1412_v45 = vld [vmem:[#allocation5 + $0x84] ss:$8 sps:$4 sm:$0xff]   ;;  %v1414_v47 = vld [vmem:[#allocation5 + $0x80] ss:$8 sps:$4 sm:$0xff]  }
  0x63   : > { %v1460_v46 = vld [vmem:[#allocation7 + $0x4] ss:$8 sps:$4 sm:$0xff]   ;;  %v1462_v48 = vld [vmem:[#allocation7] ss:$8 sps:$4 sm:$0xff]   ;;  %v1463_v49 = vld [vmem:[#allocation7 + $0xf4] ss:$8 sps:$4 sm:$0xff]  }
  0x64   : > { %945 = vmatpush1.bf16.msra.mxu1 %v1447_v29  ;;  %v1415_v50 = vld [vmem:[%s1814_s6] ss:$8 sps:$4 sm:$0xff]   ;;  %v1418_v51 = vld [vmem:[%s1814_s6 + $0x14] ss:$8 sps:$4 sm:$0xff]   ;;  %v1465_v52 = vld [vmem:[#allocation7 + $0xf0] ss:$8 sps:$4 sm:$0xff]  }
  0x65   : > { %584 = vmatpush1.bf16.msra.mxu0 %v1381_v9  ;;  %946 = vmatprep.subr.bf16.mxu1 %v1448_v30  ;;  %v1466_v53 = vld [vmem:[#allocation7 + $0xe4] ss:$8 sps:$4 sm:$0xff]   ;;  %v1468_v54 = vld [vmem:[#allocation7 + $0xe0] ss:$8 sps:$4 sm:$0xff]   ;;  %v1469_v55 = vld [vmem:[#allocation7 + $0xd4] ss:$8 sps:$4 sm:$0xff]  }
  0x66   : > { %585 = vmatprep.subr.bf16.mxu0 %v1382_v10  ;;  %v1420_v56 = vld [vmem:[%s1814_s6 + $0x10] ss:$8 sps:$4 sm:$0xff]   ;;  %v1421_v57 = vld [vmem:[%s1814_s6 + $0x24] ss:$8 sps:$4 sm:$0xff]   ;;  %v1474_v60 = vld [vmem:[#allocation7 + $0xc0] ss:$8 sps:$4 sm:$0xff]  }
  0x67   : > { %v1471_v58 = vld [vmem:[#allocation7 + $0xd0] ss:$8 sps:$4 sm:$0xff]   ;;  %v1472_v59 = vld [vmem:[#allocation7 + $0xc4] ss:$8 sps:$4 sm:$0xff]   ;;  %v1475_v61 = vld [vmem:[#allocation7 + $0xb4] ss:$8 sps:$4 sm:$0xff]  }
  0x68   : > { %947 = vmatpush1.bf16.msra.mxu1 %v1450_v33  ;;  %v1423_v62 = vld [vmem:[%s1814_s6 + $0x20] ss:$8 sps:$4 sm:$0xff]   ;;  %v1424_v63 = vld [vmem:[%s1814_s6 + $0x34] ss:$8 sps:$4 sm:$0xff]   ;;  %v1477_v0 = vld [vmem:[#allocation7 + $0xb0] ss:$8 sps:$4 sm:$0xff]  }
  0x69   : > { %586 = vmatpush1.bf16.msra.mxu0 %v1384_v11  ;;  %948 = vmatprep.subr.bf16.mxu1 %v1451_v34  ;;  %v1426_v1 = vld [vmem:[%s1814_s6 + $0x30] ss:$8 sps:$4 sm:$0xff]   ;;  %v1427_v2 = vld [vmem:[%s1814_s6 + $0x44] ss:$8 sps:$4 sm:$0xff]   ;;  %v1429_v3 = vld [vmem:[%s1814_s6 + $0x40] ss:$8 sps:$4 sm:$0xff]  }
  0x6a   : > { %587 = vmatprep.subr.bf16.mxu0 %v1385_v12  ;;  %v1430_v4 = vld [vmem:[%s1814_s6 + $0x54] ss:$8 sps:$4 sm:$0xff]   ;;  %v1432_v5 = vld [vmem:[%s1814_s6 + $0x50] ss:$8 sps:$4 sm:$0xff]   ;;  %v1433_v6 = vld [vmem:[%s1814_s6 + $0x64] ss:$8 sps:$4 sm:$0xff]  }
  0x6b   : > { %v1435_v7 = vld [vmem:[%s1814_s6 + $0x60] ss:$8 sps:$4 sm:$0xff]   ;;  %v1436_v8 = vld [vmem:[%s1814_s6 + $0x74] ss:$8 sps:$4 sm:$0xff]   ;;  %v1438_v9 = vld [vmem:[%s1814_s6 + $0x70] ss:$8 sps:$4 sm:$0xff]  }
  0x6c   : > { %949 = vmatpush1.bf16.msra.mxu1 %v1453_v37  ;;  %v1478_v10 = vld [vmem:[#allocation7 + $0xa4] ss:$8 sps:$4 sm:$0xff]   ;;  %v1480_v11 = vld [vmem:[#allocation7 + $0xa0] ss:$8 sps:$4 sm:$0xff]   ;;  %v1481_v12 = vld [vmem:[#allocation7 + $0x94] ss:$8 sps:$4 sm:$0xff]  }
  0x6d   : > { %588 = vmatpush1.bf16.msra.mxu0 %v1387_v14  ;;  %950 = vmatprep.subr.bf16.mxu1 %v1454_v38  ;;  %v1483_v13 = vld [vmem:[#allocation7 + $0x90] ss:$8 sps:$4 sm:$0xff]   ;;  %v1484_v14 = vld [vmem:[#allocation7 + $0x84] ss:$8 sps:$4 sm:$0xff]   ;;  %v323_v20 = vld [vmem:[%s2016_s2] sm:$0x3] }
  0x6e   : > { %589 = vmatprep.subr.bf16.mxu0 %v1388_v15  ;;  %v1486_v15 = vld [vmem:[#allocation7 + $0x80] ss:$8 sps:$4 sm:$0xff]   ;;  %s1205_s12 = sshll.u32 %s1810_s30, 8  ;;  %s1295_s14 = sshll.u32 %s1696_s22, 12 }
  0x6f   : > { %s1900_s13 = scalar_lea.vmem [#allocation8], %s1205_s12  ;;  %s1967_s17 = scalar_lea.hbm %s2019_s5, %s1295_s14 }
  0x70   : > { %951 = vmatpush1.bf16.msra.mxu1 %v1456_v40  ;;  %s1100_s7 = sshll.u32 %s1900_s13, 4  ;;  %s1086_s22 = scalar_lea.sflag [#allocation4], %s1810_s30  ;;  %s1969_s7 = int_to_ptr.vmem [resolvable:$true] %s1100_s7 }
  0x71   : > { %590 = vmatpush1.bf16.msra.mxu0 %v1390_v16  ;;  %952 = vmatprep.subr.bf16.mxu1 %v1457_v42  ;;  %v325_v16 = vlaneseq  ;;  %s1567_s16 = scalar_lea.vmem %s1969_s7, 4096  ;;  %p2036_p2 = scmp.ne.s32.totalorder %s2029_s23, 0 }
  0x72   : > { %591 = vmatprep.subr.bf16.mxu0 %v1391_v17  ;;  %p1568_p3 = scmp.ne.s32.totalorder %s1969_s7, %s1567_s16  ;;  %s1642_s8 = smov [#allocation8]  }
  0x73   : > { %v1840_v17 = vshrl.u32 %v325_v16, 7  ;;  %s1571_s29 = sshll.u32 %s1642_s8, 4  ;;  %s1572_s29 = int_to_ptr.vmem [resolvable:$false] %s1571_s29 }
  0x74   : > { %953 = vmatpush1.bf16.msra.mxu1 %v1459_v44  ;;  %p1569_p7 = pnand %p1568_p3, %p2036_p2  ;;  %s1573_s6 = scalar_lea.vmem %s1572_s29, 8192 }
  0x75   : > { %592 = vmatpush2.bf16.msra.mxu0 %v1393_v18  ;;  %954 = vmatprep.subr.bf16.mxu1 %v1460_v46  ;;  %v331_v18 = vsub.s32 1, %v1840_v17  ;;  %p1574_p12 = scmp.lt.s32.totalorder %s1969_s7, %s1572_s29  ;;  %p1575_p13 = scmp.lt.s32.totalorder %s1573_s6, %s1567_s16 }
  0x76   : > { %593 = vmatprep.subr.bf16.mxu0 %v1394_v19  ;;  %v327_v19 = vsub.s32 0, %v1840_v17  ;;  %p1570_p11 = pneg %p1569_p7 }
  0x77   : > { %p1576_p0 = por %p1575_p13, %p1574_p12 }
  0x78   : > { %955 = vmatpush1.bf16.msra.mxu1 %v1462_v48  ;;  %v1853_v23 = vrot.slane %v323_v20, %v327_v19 }
  0x79   : > { %594 = vmatpush2.bf16.msra.mxu0 %v1396_v22  ;;  %956 = vmatprep.subr.bf16.mxu1 %v1463_v49  ;;  %v1849_v22 = vrot.slane %v323_v20, %v331_v18  ;;  %p1577_p5 = pnand %p1576_p0, %p1570_p11 }
  0x7a   : > { %595 = vmatprep.subr.bf16.mxu0 %v1397_v24 }
  0x7c   : > { %957 = vmatpush2.bf16.msra.mxu1 %v1465_v52 }
  0x7d   : > { %596 = vmatpush2.bf16.msra.mxu0 %v1399_v27  ;;  %958 = vmatprep.subr.bf16.mxu1 %v1466_v53 }
  0x7e   : > { %597 = vmatprep.subr.bf16.mxu0 %v1400_v28 }
  0x80   : > { %959 = vmatpush2.bf16.msra.mxu1 %v1468_v54 }
  0x81   : > { %598 = vmatpush2.bf16.msra.mxu0 %v1402_v31  ;;  %960 = vmatprep.subr.bf16.mxu1 %v1469_v55 }
  0x82   : > { %599 = vmatprep.subr.bf16.mxu0 %v1403_v32 }
  0x84   : > { %961 = vmatpush2.bf16.msra.mxu1 %v1471_v58 }
  0x85   : > { %600 = vmatpush2.bf16.msra.mxu0 %v1405_v35  ;;  %962 = vmatprep.subr.bf16.mxu1 %v1472_v59 }
  0x86   : > { %601 = vmatprep.subr.bf16.mxu0 %v1406_v36 }
  0x88   : > { %963 = vmatpush2.bf16.msra.mxu1 %v1474_v60 }
  0x89   : > { %602 = vmatpush2.bf16.msra.mxu0 %v1408_v39  ;;  %964 = vmatprep.subr.bf16.mxu1 %v1475_v61 }
  0x8a   : > { %603 = vmatprep.subr.bf16.mxu0 %v1409_v41 }
  0x8c   : > { %965 = vmatpush2.bf16.msra.mxu1 %v1477_v0 }
  0x8d   : > { %604 = vmatpush2.bf16.msra.mxu0 %v1411_v43  ;;  %966 = vmatprep.subr.bf16.mxu1 %v1478_v10 }
  0x8e   : > { %605 = vmatprep.subr.bf16.mxu0 %v1412_v45 }
  0x90   : > { %967 = vmatpush2.bf16.msra.mxu1 %v1480_v11 }
  0x91   : > { %606 = vmatpush2.bf16.msra.mxu0 %v1414_v47  ;;  %968 = vmatprep.subr.bf16.mxu1 %v1481_v12 }
  0x94   : > { %608 = vmatmul.mubr.bf16.vlgmr.msra.gmra.mxu0 %v1415_v50  ;;  %969 = vmatpush2.bf16.msra.mxu1 %v1483_v13 }
  0x95   : > { %617 = vmatprep.mubr.bf16.mxu0 %v1418_v51  ;;  %970 = vmatprep.subr.bf16.mxu1 %v1484_v14 }
  0x98   : > { %971 = vmatpush2.bf16.msra.mxu1 %v1486_v15 }
  0x9c   : > { %618 = vmatmul.mubr.bf16.gmra.mxu0 %v1420_v56 }
  0x9d   : > { %627 = vmatprep.mubr.bf16.mxu0 %v1421_v57 }
  0xa4   : > { %628 = vmatmul.mubr.bf16.gmra.mxu0 %v1423_v62 }
  0xa5   : > { %637 = vmatprep.mubr.bf16.mxu0 %v1424_v63 }
  0xac   : > { %638 = vmatmul.mubr.bf16.gmra.mxu0 %v1426_v1 }
  0xad   : > { %647 = vmatprep.mubr.bf16.mxu0 %v1427_v2 }
  0xb4   : > { %648 = vmatmul.mubr.bf16.gmra.mxu0 %v1429_v3 }
  0xb5   : > { %657 = vmatprep.mubr.bf16.mxu0 %v1430_v4 }
  0xbc   : > { %658 = vmatmul.mubr.bf16.gmra.mxu0 %v1432_v5 }
  0xbd   : > { %667 = vmatprep.mubr.bf16.mxu0 %v1433_v6 }
  0xc4   : > { %668 = vmatmul.mubr.bf16.gmra.mxu0 %v1435_v7 }
  0xc5   : > { %677 = vmatprep.mubr.bf16.mxu0 %v1436_v8 }
  0xcc   : > { %678 = vmatmul.mubr.bf16.gmra.mxu0 %v1438_v9 }
 0x154   : > { %v609_v21 = vpop.f32.mrf.mxu0 }
 0x155   : > { %v610_v28 = vadd.f32 %v609_v21, %v1853_v23 }
 0x156   : > { %v611_v24 = vpop.f32.mrf.mxu0 }
 0x157   : > { %v612_v26 = vadd.f32 %v611_v24, %v1849_v22  ;;  %v688_v35 = vmax.f32 %v610_v28, 0.0 }
 0x158   : > { %v613_v25 = vpop.f32.mrf.mxu0 }
 0x159   : > { %v614_v27 = vadd.f32 %v613_v25, %v1853_v23  ;;  %v689_v33 = vmax.f32 %v612_v26, 0.0 }
 0x15a   : > { %v615_v29 = vpop.f32.mrf.mxu0 }
 0x15b   : > { %v616_v30 = vadd.f32 %v615_v29, %v1849_v22  ;;  %v690_v31 = vmax.f32 %v614_v27, 0.0 }
 0x15c   : > { %v619_v32 = vpop.f32.mrf.mxu0 }
 0x15d   : > { %v691_v34 = vmax.f32 %v616_v30, 0.0  ;;  %v720_v38 = vpack.c.bf16 %v690_v31, %v688_v35  ;;  %v620_v42 = vadd.f32 %v619_v32, %v1853_v23 }
 0x15e   : > { %v621_v36 = vpop.f32.mrf.mxu0 }
 0x15f   : > { %v721_v37 = vpack.c.bf16 %v691_v34, %v689_v33  ;;  %v622_v40 = vadd.f32 %v621_v36, %v1849_v22  ;;  %v692_v49 = vmax.f32 %v620_v42, 0.0 }
 0x160   : > { %v623_v39 = vpop.f32.mrf.mxu0 }
 0x161   : > { %v624_v41 = vadd.f32 %v623_v39, %v1853_v23  ;;  %972 = vmatprep.mubr.bf16.mxu1 %v721_v37  ;;  %v693_v47 = vmax.f32 %v622_v40, 0.0 }
 0x162   : > { %v625_v43 = vpop.f32.mrf.mxu0  ;;  %973 = vmatmul.mubr.bf16.vlgmr.msra.gmra.mxu1 %v720_v38 }
 0x163   : > { %v626_v44 = vadd.f32 %v625_v43, %v1849_v22  ;;  %v694_v45 = vmax.f32 %v624_v41, 0.0 }
 0x164   : > { %v629_v46 = vpop.f32.mrf.mxu0 }
 0x165   : > { %v695_v48 = vmax.f32 %v626_v44, 0.0  ;;  %v722_v52 = vpack.c.bf16 %v694_v45, %v692_v49  ;;  %v630_v56 = vadd.f32 %v629_v46, %v1853_v23 }
 0x166   : > { %v631_v50 = vpop.f32.mrf.mxu0 }
 0x167   : > { %v723_v51 = vpack.c.bf16 %v695_v48, %v693_v47  ;;  %v632_v54 = vadd.f32 %v631_v50, %v1849_v22  ;;  %v696_v63 = vmax.f32 %v630_v56, 0.0 }
 0x168   : > { %v633_v53 = vpop.f32.mrf.mxu0 }
 0x169   : > { %v634_v55 = vadd.f32 %v633_v53, %v1853_v23  ;;  %982 = vmatprep.mubr.bf16.mxu1 %v723_v51  ;;  %v697_v61 = vmax.f32 %v632_v54, 0.0 }
 0x16a   : > { %v635_v57 = vpop.f32.mrf.mxu0  ;;  %983 = vmatmul.mubr.bf16.gmra.mxu1 %v722_v52 }
 0x16b   : > { %v636_v58 = vadd.f32 %v635_v57, %v1849_v22  ;;  %v698_v59 = vmax.f32 %v634_v55, 0.0 }
 0x16c   : > { %v639_v60 = vpop.f32.mrf.mxu0 }
 0x16d   : > { %v699_v62 = vmax.f32 %v636_v58, 0.0  ;;  %v724_v2 = vpack.c.bf16 %v698_v59, %v696_v63  ;;  %v640_v6 = vadd.f32 %v639_v60, %v1853_v23 }
 0x16e   : > { %v641_v0 = vpop.f32.mrf.mxu0 }
 0x16f   : > { %v725_v1 = vpack.c.bf16 %v699_v62, %v697_v61  ;;  %v642_v4 = vadd.f32 %v641_v0, %v1849_v22  ;;  %v700_v13 = vmax.f32 %v640_v6, 0.0 }
 0x170   : > { %v643_v3 = vpop.f32.mrf.mxu0 }
 0x171   : > { %v644_v5 = vadd.f32 %v643_v3, %v1853_v23  ;;  %992 = vmatprep.mubr.bf16.mxu1 %v725_v1  ;;  %v701_v11 = vmax.f32 %v642_v4, 0.0 }
 0x172   : > { %v645_v7 = vpop.f32.mrf.mxu0  ;;  %993 = vmatmul.mubr.bf16.gmra.mxu1 %v724_v2 }
 0x173   : > { %v646_v8 = vadd.f32 %v645_v7, %v1849_v22  ;;  %v702_v9 = vmax.f32 %v644_v5, 0.0 }
 0x174   : > { %v649_v10 = vpop.f32.mrf.mxu0 }
 0x175   : > { %v703_v12 = vmax.f32 %v646_v8, 0.0  ;;  %v726_v16 = vpack.c.bf16 %v702_v9, %v700_v13  ;;  %v650_v25 = vadd.f32 %v649_v10, %v1853_v23 }
 0x176   : > { %v651_v14 = vpop.f32.mrf.mxu0 }
 0x177   : > { %v727_v15 = vpack.c.bf16 %v703_v12, %v701_v11  ;;  %v652_v21 = vadd.f32 %v651_v14, %v1849_v22  ;;  %v704_v32 = vmax.f32 %v650_v25, 0.0  ;;  %v768_v12 = vld [vmem:[%s2018_s4] sm:$0x3] }
 0x178   : > { %v653_v20 = vpop.f32.mrf.mxu0 }
 0x179   : > { %v654_v24 = vadd.f32 %v653_v20, %v1853_v23  ;;  %1002 = vmatprep.mubr.bf16.mxu1 %v727_v15  ;;  %v705_v30 = vmax.f32 %v652_v21, 0.0 }
 0x17a   : > { %v655_v26 = vpop.f32.mrf.mxu0  ;;  %1003 = vmatmul.mubr.bf16.gmra.mxu1 %v726_v16 }
 0x17b   : > { %v656_v27 = vadd.f32 %v655_v26, %v1849_v22  ;;  %v706_v28 = vmax.f32 %v654_v24, 0.0 }
 0x17c   : > { %v659_v29 = vpop.f32.mrf.mxu0 }
 0x17d   : > { %v707_v31 = vmax.f32 %v656_v27, 0.0  ;;  %v728_v35 = vpack.c.bf16 %v706_v28, %v704_v32  ;;  %v660_v39 = vadd.f32 %v659_v29, %v1853_v23 }
 0x17e   : > { %v661_v33 = vpop.f32.mrf.mxu0 }
 0x17f   : > { %v729_v34 = vpack.c.bf16 %v707_v31, %v705_v30  ;;  %v662_v37 = vadd.f32 %v661_v33, %v1849_v22  ;;  %v708_v46 = vmax.f32 %v660_v39, 0.0 }
 0x180   : > { %v663_v36 = vpop.f32.mrf.mxu0 }
 0x181   : > { %v664_v38 = vadd.f32 %v663_v36, %v1853_v23  ;;  %1012 = vmatprep.mubr.bf16.mxu1 %v729_v34  ;;  %v709_v44 = vmax.f32 %v662_v37, 0.0 }
 0x182   : > { %v665_v40 = vpop.f32.mrf.mxu0  ;;  %1013 = vmatmul.mubr.bf16.gmra.mxu1 %v728_v35 }
 0x183   : > { %v666_v41 = vadd.f32 %v665_v40, %v1849_v22  ;;  %v710_v42 = vmax.f32 %v664_v38, 0.0 }
 0x184   : > { %v669_v43 = vpop.f32.mrf.mxu0 }
 0x185   : > { %v711_v45 = vmax.f32 %v666_v41, 0.0  ;;  %v730_v49 = vpack.c.bf16 %v710_v42, %v708_v46  ;;  %v670_v53 = vadd.f32 %v669_v43, %v1853_v23 }
 0x186   : > { %v671_v47 = vpop.f32.mrf.mxu0 }
 0x187   : > { %v731_v48 = vpack.c.bf16 %v711_v45, %v709_v44  ;;  %v672_v51 = vadd.f32 %v671_v47, %v1849_v22  ;;  %v712_v60 = vmax.f32 %v670_v53, 0.0 }
 0x188   : > { %v673_v50 = vpop.f32.mrf.mxu0 }
 0x189   : > { %v674_v52 = vadd.f32 %v673_v50, %v1853_v23  ;;  %1022 = vmatprep.mubr.bf16.mxu1 %v731_v48  ;;  %v713_v58 = vmax.f32 %v672_v51, 0.0 }
 0x18a   : > { %v675_v54 = vpop.f32.mrf.mxu0  ;;  %1023 = vmatmul.mubr.bf16.gmra.mxu1 %v730_v49 }
 0x18b   : > { %v676_v55 = vadd.f32 %v675_v54, %v1849_v22  ;;  %v714_v56 = vmax.f32 %v674_v52, 0.0 }
 0x18c   : > { %v679_v57 = vpop.f32.mrf.mxu0 }
 0x18d   : > { %v715_v59 = vmax.f32 %v676_v55, 0.0  ;;  %v732_v63 = vpack.c.bf16 %v714_v56, %v712_v60  ;;  %v680_v3 = vadd.f32 %v679_v57, %v1853_v23 }
 0x18e   : > { %v681_v61 = vpop.f32.mrf.mxu0 }
 0x18f   : > { %v733_v62 = vpack.c.bf16 %v715_v59, %v713_v58  ;;  %v682_v1 = vadd.f32 %v681_v61, %v1849_v22  ;;  %v716_v9 = vmax.f32 %v680_v3, 0.0 }
 0x190   : > { %v683_v0 = vpop.f32.mrf.mxu0 }
 0x191   : > { %v684_v2 = vadd.f32 %v683_v0, %v1853_v23  ;;  %1032 = vmatprep.mubr.bf16.mxu1 %v733_v62  ;;  %v717_v7 = vmax.f32 %v682_v1, 0.0  ;;  %v1893_v23 = vrot.slane %v768_v12, %v327_v19 }
 0x192   : > { %v685_v4 = vpop.f32.mrf.mxu0  ;;  %1033 = vmatmul.mubr.bf16.gmra.mxu1 %v732_v63 }
 0x193   : > { %v686_v5 = vadd.f32 %v685_v4, %v1849_v22  ;;  %v718_v6 = vmax.f32 %v684_v2, 0.0  ;;  %v1897_v22 = vrot.slane %v768_v12, %v331_v18 }
 0x195   : > { %v719_v8 = vmax.f32 %v686_v5, 0.0  ;;  %v734_v11 = vpack.c.bf16 %v718_v6, %v716_v9 }
 0x197   : > { %v735_v10 = vpack.c.bf16 %v719_v8, %v717_v7 }
 0x199   : > { %1042 = vmatprep.mubr.bf16.mxu1 %v735_v10 }
 0x19a   : > { %1043 = vmatmul.mubr.bf16.gmra.mxu1 %v734_v11 }
 0x222   : > { %v974_v13 = vpop.f32.mrf.mxu1 }
 0x223   : > { %v975_v14 = vadd.f32 %v974_v13, %v1893_v23 }
 0x224   : > { %v976_v15 = vpop.f32.mrf.mxu1 }
 0x225   : > { %1053 = vst [vmem:[%s1900_s13] sm:$0xff] %v975_v14  ;;  %v977_v19 = vadd.f32 %v976_v15, %v1897_v22 }
 0x226   : > { %v978_v16 = vpop.f32.mrf.mxu1 }
 0x227   : > { %1054 = vst [vmem:[%s1900_s13 + $0x8] sm:$0xff] %v977_v19  ;;  %v979_v17 = vadd.f32 %v978_v16, %v1893_v23 }
 0x228   : > { %v980_v18 = vpop.f32.mrf.mxu1 }
 0x229   : > { %1055 = vst [vmem:[%s1900_s13 + $0x10] sm:$0xff] %v979_v17  ;;  %v981_v20 = vadd.f32 %v980_v18, %v1897_v22 }
 0x22a   : > { %v984_v21 = vpop.f32.mrf.mxu1 }
 0x22b   : > { %1056 = vst [vmem:[%s1900_s13 + $0x18] sm:$0xff] %v981_v20  ;;  %v985_v24 = vadd.f32 %v984_v21, %v1893_v23 }
 0x22c   : > { %v986_v25 = vpop.f32.mrf.mxu1 }
 0x22d   : > { %1057 = vst [vmem:[%s1900_s13 + $0x20] sm:$0xff] %v985_v24  ;;  %v987_v26 = vadd.f32 %v986_v25, %v1897_v22 }
 0x22e   : > { %v988_v27 = vpop.f32.mrf.mxu1 }
 0x22f   : > { %1058 = vst [vmem:[%s1900_s13 + $0x28] sm:$0xff] %v987_v26  ;;  %v989_v28 = vadd.f32 %v988_v27, %v1893_v23 }
 0x230   : > { %v990_v29 = vpop.f32.mrf.mxu1 }
 0x231   : > { %1059 = vst [vmem:[%s1900_s13 + $0x30] sm:$0xff] %v989_v28  ;;  %v991_v30 = vadd.f32 %v990_v29, %v1897_v22 }
 0x232   : > { %v994_v31 = vpop.f32.mrf.mxu1 }
 0x233   : > { %1060 = vst [vmem:[%s1900_s13 + $0x38] sm:$0xff] %v991_v30  ;;  %v995_v32 = vadd.f32 %v994_v31, %v1893_v23 }
 0x234   : > { %v996_v33 = vpop.f32.mrf.mxu1 }
 0x235   : > { %1061 = vst [vmem:[%s1900_s13 + $0x40] sm:$0xff] %v995_v32  ;;  %v997_v34 = vadd.f32 %v996_v33, %v1897_v22 }
 0x236   : > { %v998_v35 = vpop.f32.mrf.mxu1 }
 0x237   : > { %1062 = vst [vmem:[%s1900_s13 + $0x48] sm:$0xff] %v997_v34  ;;  %v999_v36 = vadd.f32 %v998_v35, %v1893_v23 }
 0x238   : > { %v1000_v37 = vpop.f32.mrf.mxu1 }
 0x239   : > { %1063 = vst [vmem:[%s1900_s13 + $0x50] sm:$0xff] %v999_v36  ;;  %v1001_v38 = vadd.f32 %v1000_v37, %v1897_v22 }
 0x23a   : > { %v1004_v39 = vpop.f32.mrf.mxu1 }
 0x23b   : > { %1064 = vst [vmem:[%s1900_s13 + $0x58] sm:$0xff] %v1001_v38  ;;  %v1005_v40 = vadd.f32 %v1004_v39, %v1893_v23 }
 0x23c   : > { %v1006_v41 = vpop.f32.mrf.mxu1 }
 0x23d   : > { %1065 = vst [vmem:[%s1900_s13 + $0x60] sm:$0xff] %v1005_v40  ;;  %v1007_v42 = vadd.f32 %v1006_v41, %v1897_v22 }
 0x23e   : > { %v1008_v43 = vpop.f32.mrf.mxu1 }
 0x23f   : > { %1066 = vst [vmem:[%s1900_s13 + $0x68] sm:$0xff] %v1007_v42  ;;  %v1009_v44 = vadd.f32 %v1008_v43, %v1893_v23 }
 0x240   : > { %v1010_v45 = vpop.f32.mrf.mxu1 }
 0x241   : > { %1067 = vst [vmem:[%s1900_s13 + $0x70] sm:$0xff] %v1009_v44  ;;  %v1011_v46 = vadd.f32 %v1010_v45, %v1897_v22 }
 0x242   : > { %v1014_v47 = vpop.f32.mrf.mxu1 }
 0x243   : > { %1068 = vst [vmem:[%s1900_s13 + $0x78] sm:$0xff] %v1011_v46  ;;  %v1015_v48 = vadd.f32 %v1014_v47, %v1893_v23 }
 0x244   : > { %v1016_v49 = vpop.f32.mrf.mxu1 }
 0x245   : > { %1069 = vst [vmem:[%s1900_s13 + $0x80] sm:$0xff] %v1015_v48  ;;  %v1017_v50 = vadd.f32 %v1016_v49, %v1897_v22 }
 0x246   : > { %v1018_v51 = vpop.f32.mrf.mxu1 }
 0x247   : > { %1070 = vst [vmem:[%s1900_s13 + $0x88] sm:$0xff] %v1017_v50  ;;  %v1019_v52 = vadd.f32 %v1018_v51, %v1893_v23 }
 0x248   : > { %v1020_v53 = vpop.f32.mrf.mxu1 }
 0x249   : > { %1071 = vst [vmem:[%s1900_s13 + $0x90] sm:$0xff] %v1019_v52  ;;  %v1021_v54 = vadd.f32 %v1020_v53, %v1897_v22 }
 0x24a   : > { %v1024_v55 = vpop.f32.mrf.mxu1 }
 0x24b   : > { %1072 = vst [vmem:[%s1900_s13 + $0x98] sm:$0xff] %v1021_v54  ;;  %v1025_v56 = vadd.f32 %v1024_v55, %v1893_v23 }
 0x24c   : > { %v1026_v57 = vpop.f32.mrf.mxu1 }
 0x24d   : > { %1073 = vst [vmem:[%s1900_s13 + $0xa0] sm:$0xff] %v1025_v56  ;;  %v1027_v58 = vadd.f32 %v1026_v57, %v1897_v22 }
 0x24e   : > { %v1028_v59 = vpop.f32.mrf.mxu1 }
 0x24f   : > { %1074 = vst [vmem:[%s1900_s13 + $0xa8] sm:$0xff] %v1027_v58  ;;  %v1029_v60 = vadd.f32 %v1028_v59, %v1893_v23 }
 0x250   : > { %v1030_v61 = vpop.f32.mrf.mxu1 }
 0x251   : > { %1075 = vst [vmem:[%s1900_s13 + $0xb0] sm:$0xff] %v1029_v60  ;;  %v1031_v62 = vadd.f32 %v1030_v61, %v1897_v22 }
 0x252   : > { %v1034_v63 = vpop.f32.mrf.mxu1 }
 0x253   : > { %1076 = vst [vmem:[%s1900_s13 + $0xb8] sm:$0xff] %v1031_v62  ;;  %v1035_v0 = vadd.f32 %v1034_v63, %v1893_v23 }
 0x254   : > { %v1036_v1 = vpop.f32.mrf.mxu1 }
 0x255   : > { %1077 = vst [vmem:[%s1900_s13 + $0xc0] sm:$0xff] %v1035_v0  ;;  %v1037_v2 = vadd.f32 %v1036_v1, %v1897_v22 }
 0x256   : > { %v1038_v3 = vpop.f32.mrf.mxu1 }
 0x257   : > { %1078 = vst [vmem:[%s1900_s13 + $0xc8] sm:$0xff] %v1037_v2  ;;  %v1039_v4 = vadd.f32 %v1038_v3, %v1893_v23 }
 0x258   : > { %v1040_v5 = vpop.f32.mrf.mxu1 }
 0x259   : > { %1079 = vst [vmem:[%s1900_s13 + $0xd0] sm:$0xff] %v1039_v4  ;;  %v1041_v6 = vadd.f32 %v1040_v5, %v1897_v22 }
 0x25a   : > { %v1044_v7 = vpop.f32.mrf.mxu1 }
 0x25b   : > { %1080 = vst [vmem:[%s1900_s13 + $0xd8] sm:$0xff] %v1041_v6  ;;  %v1045_v8 = vadd.f32 %v1044_v7, %v1893_v23 }
 0x25c   : > { %v1046_v9 = vpop.f32.mrf.mxu1 }
 0x25d   : > { %1081 = vst [vmem:[%s1900_s13 + $0xe0] sm:$0xff] %v1045_v8  ;;  %v1047_v10 = vadd.f32 %v1046_v9, %v1897_v22 }
 0x25e   : > { %v1048_v11 = vpop.f32.mrf.mxu1 }
 0x25f   : > { %1082 = vst [vmem:[%s1900_s13 + $0xe8] sm:$0xff] %v1047_v10  ;;  %v1049_v12 = vadd.f32 %v1048_v11, %v1893_v23 }
 0x260   : > { %v1050_v13 = vpop.f32.mrf.mxu1 }
 0x261   : > { %1083 = vst [vmem:[%s1900_s13 + $0xf0] sm:$0xff] %v1049_v12  ;;  %v1051_v14 = vadd.f32 %v1050_v13, %v1897_v22 }
 0x263   : > { %1084 = vst [vmem:[%s1900_s13 + $0xf8] sm:$0xff] %v1051_v14 }
 0x264   : > { %1580 = shalt.err (!%p1577_p5)
}
 0x265   : > { %s1581_s24 = scalar_lea.hbm %s1967_s17, 4096  ;;  %s1585_s10 = scalar_lea.hbm %s2019_s5, 16384 }
 0x266   : > { %p1582_p10 = scmp.ne.s32.totalorder %s1967_s17, %s1581_s24  ;;  %p1586_p4 = scmp.lt.s32.totalorder %s1967_s17, %s2019_s5 }
 0x267   : > { %p1587_p6 = scmp.lt.s32.totalorder %s1585_s10, %s1581_s24 }
 0x268   : > { %p1583_p9 = pnand %p1582_p10, %p2036_p2 }
 0x269   : > { %p1588_p8 = por %p1587_p6, %p1586_p4 }
 0x26a   : > { %p1584_p1 = pneg %p1583_p9 }
 0x26c   : > { %p1589_p3 = pnand %p1588_p8, %p1584_p1 }
 0x26e   : > { %1592 = shalt.err (!%p1589_p3)
}
 0x26f   : > { %s1643_s14 = smov 256   ;;  %s1644_s28 = smov 16  }
 0x270   : > { %1306 = dma.vmem_to_hbm [thread:$0]  (%p2036_p2), %s1969_s7, 4096, %s1967_s17, %s1086_s22, %s1643_s14, %s1643_s14, %s1644_s28  }
 0x271 PF: > { %p1328_p7 = scmp.ge.s32.totalorder %s1635_s21, 2  ;;  %s1115_s11 = sand.u32 1, %s1623_s18  }
 0x272   : > { %p2037_p11 = scmp.ne.s32.totalorder %s2026_s25, 0  ;;  %s1116_s16 = scalar_lea.sflag [#allocation4], %s1115_s11 }
 0x274   : > { %p1320_p12 = pnand %p1328_p7, %p2037_p11 }
 0x276   : > { %p1321_p13 = pneg %p1320_p12 }
 0x278   : > { %1618 = dma.done.wait (%p1321_p13), %s1116_s16, 4096  }
 0x279   : > { %1620 = vsyncadd (%p1321_p13), %s1116_s16, 4294963200  ;;  %p19_p0 = scmp.ge.s32.totalorder %s1752_s15, 6   ;;  %s2038_s18 = smov %s1627_s19 }
 0x27a   : > { %s2039_s19 = smov %s1631_s20  ;;  %s2040_s20 = smov %s1768_s27 }
 0x27b   : > { %s2041_s21 = smov %s1752_s15  ;;  %21 = sbr.rel (!%p19_p0) target bundleno = 6 (0x6), region = 93 }
 0x280   :  { %1121 = vsyncpa [#allocation3], 1 }
 0x281   :  { %1123 = vsyncpa [#allocation3 + $0x1], 1 }
 0x282   :  { %1124 = vsyncpa [#allocation6], 1 }
 0x283   :  { %1125 = vsyncpa [#allocation4], 1 }
 0x284   :  { %1127 = vsyncpa [#allocation4 + $0x1], 1 }

</bundles_post_ra>
